<compile_context>
chip_gen: v7x
topology: tpu7x:2x2x1
jax: 0.10.0
libtpu: 0.0.40
codegen_flags: <defaults>
</compile_context>

<pallas_src>
import jax
import jax.numpy as jnp
from jax.experimental import pallas as pl
from jax.experimental.pallas import tpu as pltpu


def mlp_kernel(w_in_ref, b_in_ref, w_out_ref, b_out_ref, x_ref, o_ref):
    # x_ref / o_ref : (TILE_ROWS, 128) lane-dense f32 batch tile in VMEM.
    # w_in/b_in/w_out: (H,) f32 in SMEM; b_out: (1,) f32 in SMEM.
    x = x_ref[...]
    hidden = w_in_ref.shape[0]          # static (H = 5) -> Python unroll

    y = jnp.zeros_like(x)
    for h in range(hidden):
        # Linear(1 -> H), unit h: z = x * w_in[h] + b_in[h]   (VPU)
        z = x * w_in_ref[h] + b_in_ref[h]
        # Sigmoid = 1 / (1 + exp(-z)): EUP exp + EUP approx reciprocal
        # (separate issue slot, effectively free under the HBM roofline).
        a = pl.reciprocal(1.0 + jnp.exp(-z), approx=True)
        # Linear(H -> 1) contribution of unit h (VPU multiply-accumulate).
        y = y + a * w_out_ref[h]

    # act_o (ReLU) is NOT applied in Model.forward -> raw linear output.
    o_ref[...] = y + b_out_ref[0]


def mlp_forward(x, w_in, b_in, w_out, b_out, *, max_tile_rows=512):
    """x: (N, 1); w_in: (H, 1); b_in: (1, H) or (H,); w_out: (1, H); b_out: (1, 1) or (1,)."""
    n = x.shape[0]
    hidden = w_in.shape[0]

    # Tiny parameters -> 1-D f32 arrays read as scalars from SMEM.
    w_in_s = w_in.reshape(hidden).astype(jnp.float32)
    b_in_s = b_in.reshape(hidden).astype(jnp.float32)
    w_out_s = w_out.reshape(hidden).astype(jnp.float32)
    b_out_s = b_out.reshape(1).astype(jnp.float32)

    # Lane-dense layout: batch on lanes, shape (rows, 128); pad with zeros.
    rows = pl.cdiv(n, 128)
    tile_rows = min(max_tile_rows, ((rows + 7) // 8) * 8)   # sublane-aligned tile
    padded_rows = pl.cdiv(rows, tile_rows) * tile_rows
    total = padded_rows * 128
    x_flat = jnp.zeros((total,), jnp.float32).at[:n].set(
        x.reshape(-1).astype(jnp.float32))
    x_lanes = x_flat.reshape(padded_rows, 128)

    grid = (padded_rows // tile_rows,)
    smem = pl.BlockSpec(memory_space=pltpu.MemorySpace.SMEM)

    out_lanes = pl.pallas_call(
        mlp_kernel,
        out_shape=jax.ShapeDtypeStruct((padded_rows, 128), jnp.float32),
        grid=grid,
        in_specs=[smem, smem, smem, smem,
                  pl.BlockSpec((tile_rows, 128), lambda i: (i, 0))],
        out_specs=pl.BlockSpec((tile_rows, 128), lambda i: (i, 0)),
        compiler_params=pltpu.CompilerParams(
            dimension_semantics=("parallel",),       # shard batch loop across TCs
            vmem_limit_bytes=32 * 1024 * 1024,       # explicit, safe on v5e/v6e/v7x
        ),
    )(w_in_s, b_in_s, w_out_s, b_out_s, x_lanes)

    # Back to the module's (N, 1) output layout.
    return out_lanes.reshape(-1)[:n].reshape(n, 1)


def mlp_reference(x, w_in, b_in, w_out, b_out):
    a = jax.nn.sigmoid(x @ w_in.T + b_in)
    return a @ w_out.T + b_out


if __name__ == "__main__":
    hidden_size = 5
    batch = 8

    key = jax.random.PRNGKey(0)
    k_x, k_wi, k_bi, k_wo, k_bo = jax.random.split(key, 5)

    # Deterministic parameter init (PyTorch-style uniform(-1/sqrt(fan_in), +)).
    bound_in = 1.0  # fan_in = 1
    w_in = jax.random.uniform(k_wi, (hidden_size, 1), jnp.float32, -bound_in, bound_in)
    b_in = jax.random.uniform(k_bi, (1, hidden_size), jnp.float32, -bound_in, bound_in)
    bound_out = 1.0 / jnp.sqrt(float(hidden_size))
    w_out = jax.random.uniform(k_wo, (1, hidden_size), jnp.float32, -bound_out, bound_out)
    b_out = jax.random.uniform(k_bo, (1, 1), jnp.float32, -bound_out, bound_out)

    x = jax.random.normal(k_x, (batch, 1), jnp.float32)

    out = mlp_forward(x, w_in, b_in, w_out, b_out)
    out = jax.block_until_ready(out)

    ref = mlp_reference(x, w_in, b_in, w_out, b_out)
    assert out.shape == (batch, 1)
    # Slightly loose tolerance: sigmoid uses the EUP approximate reciprocal.
    assert jnp.allclose(out, ref, atol=2e-3, rtol=2e-3), (out, ref)

    print("KERNEL_OK")
</pallas_src>

<mosaic_0001>
module attributes {stable_mosaic.version = 11 : i64} {
  func.func @mlp_kernel(%arg0: i32, %arg1: memref<5xf32, #tpu.memory_space<smem>>, %arg2: memref<5xf32, #tpu.memory_space<smem>>, %arg3: memref<5xf32, #tpu.memory_space<smem>>, %arg4: memref<1xf32, #tpu.memory_space<smem>>, %arg5: memref<8x128xf32, #tpu.memory_space<vmem>>, %arg6: memref<8x128xf32, #tpu.memory_space<vmem>>) attributes {dimension_semantics = [#tpu.dimension_semantics<parallel>], iteration_bounds = array<i64: 1>, scalar_prefetch = 0 : i64, scratch_operands = 0 : i64, tpu.core_type = #tpu.core_type<tc>, window_params = [{transform_indices = @transform_0, window_bounds = array<i64: 5>}, {transform_indices = @transform_1, window_bounds = array<i64: 5>}, {transform_indices = @transform_2, window_bounds = array<i64: 5>}, {transform_indices = @transform_3, window_bounds = array<i64: 1>}, {transform_indices = @transform_4, window_bounds = array<i64: 8, 128>}, {transform_indices = @transform_5, window_bounds = array<i64: 8, 128>}]} {
    %c0 = arith.constant 0 : index
    %c0_0 = arith.constant 0 : index
    %0 = vector.load %arg5[%c0, %c0_0] : memref<8x128xf32, #tpu.memory_space<vmem>>, vector<8x128xf32>
    %cst = arith.constant 0.000000e+00 : f32
    %1 = vector.broadcast %cst : f32 to vector<8x128xf32>
    %c0_1 = arith.constant 0 : index
    %2 = memref.load %arg1[%c0_1] : memref<5xf32, #tpu.memory_space<smem>>
    %3 = vector.broadcast %2 : f32 to vector<8x128xf32>
    %4 = arith.mulf %0, %3 : vector<8x128xf32>
    %c0_2 = arith.constant 0 : index
    %5 = memref.load %arg2[%c0_2] : memref<5xf32, #tpu.memory_space<smem>>
    %6 = vector.broadcast %5 : f32 to vector<8x128xf32>
    %7 = arith.addf %4, %6 : vector<8x128xf32>
    %cst_3 = arith.constant 0.000000e+00 : f32
    %8 = vector.broadcast %cst_3 : f32 to vector<8x128xf32>
    %9 = arith.subf %8, %7 : vector<8x128xf32>
    %10 = math.exp %9 : vector<8x128xf32>
    %cst_4 = arith.constant 1.000000e+00 : f32
    %11 = vector.broadcast %cst_4 : f32 to vector<8x128xf32>
    %12 = arith.addf %11, %10 : vector<8x128xf32>
    %13 = tpu.reciprocal %12 {approx = true} : vector<8x128xf32> -> vector<8x128xf32>
    %c0_5 = arith.constant 0 : index
    %14 = memref.load %arg3[%c0_5] : memref<5xf32, #tpu.memory_space<smem>>
    %15 = vector.broadcast %14 : f32 to vector<8x128xf32>
    %16 = arith.mulf %13, %15 : vector<8x128xf32>
    %17 = arith.addf %1, %16 : vector<8x128xf32>
    %c1 = arith.constant 1 : index
    %18 = memref.load %arg1[%c1] : memref<5xf32, #tpu.memory_space<smem>>
    %19 = vector.broadcast %18 : f32 to vector<8x128xf32>
    %20 = arith.mulf %0, %19 : vector<8x128xf32>
    %c1_6 = arith.constant 1 : index
    %21 = memref.load %arg2[%c1_6] : memref<5xf32, #tpu.memory_space<smem>>
    %22 = vector.broadcast %21 : f32 to vector<8x128xf32>
    %23 = arith.addf %20, %22 : vector<8x128xf32>
    %cst_7 = arith.constant 0.000000e+00 : f32
    %24 = vector.broadcast %cst_7 : f32 to vector<8x128xf32>
    %25 = arith.subf %24, %23 : vector<8x128xf32>
    %26 = math.exp %25 : vector<8x128xf32>
    %cst_8 = arith.constant 1.000000e+00 : f32
    %27 = vector.broadcast %cst_8 : f32 to vector<8x128xf32>
    %28 = arith.addf %27, %26 : vector<8x128xf32>
    %29 = tpu.reciprocal %28 {approx = true} : vector<8x128xf32> -> vector<8x128xf32>
    %c1_9 = arith.constant 1 : index
    %30 = memref.load %arg3[%c1_9] : memref<5xf32, #tpu.memory_space<smem>>
    %31 = vector.broadcast %30 : f32 to vector<8x128xf32>
    %32 = arith.mulf %29, %31 : vector<8x128xf32>
    %33 = arith.addf %17, %32 : vector<8x128xf32>
    %c2 = arith.constant 2 : index
    %34 = memref.load %arg1[%c2] : memref<5xf32, #tpu.memory_space<smem>>
    %35 = vector.broadcast %34 : f32 to vector<8x128xf32>
    %36 = arith.mulf %0, %35 : vector<8x128xf32>
    %c2_10 = arith.constant 2 : index
    %37 = memref.load %arg2[%c2_10] : memref<5xf32, #tpu.memory_space<smem>>
    %38 = vector.broadcast %37 : f32 to vector<8x128xf32>
    %39 = arith.addf %36, %38 : vector<8x128xf32>
    %cst_11 = arith.constant 0.000000e+00 : f32
    %40 = vector.broadcast %cst_11 : f32 to vector<8x128xf32>
    %41 = arith.subf %40, %39 : vector<8x128xf32>
    %42 = math.exp %41 : vector<8x128xf32>
    %cst_12 = arith.constant 1.000000e+00 : f32
    %43 = vector.broadcast %cst_12 : f32 to vector<8x128xf32>
    %44 = arith.addf %43, %42 : vector<8x128xf32>
    %45 = tpu.reciprocal %44 {approx = true} : vector<8x128xf32> -> vector<8x128xf32>
    %c2_13 = arith.constant 2 : index
    %46 = memref.load %arg3[%c2_13] : memref<5xf32, #tpu.memory_space<smem>>
    %47 = vector.broadcast %46 : f32 to vector<8x128xf32>
    %48 = arith.mulf %45, %47 : vector<8x128xf32>
    %49 = arith.addf %33, %48 : vector<8x128xf32>
    %c3 = arith.constant 3 : index
    %50 = memref.load %arg1[%c3] : memref<5xf32, #tpu.memory_space<smem>>
    %51 = vector.broadcast %50 : f32 to vector<8x128xf32>
    %52 = arith.mulf %0, %51 : vector<8x128xf32>
    %c3_14 = arith.constant 3 : index
    %53 = memref.load %arg2[%c3_14] : memref<5xf32, #tpu.memory_space<smem>>
    %54 = vector.broadcast %53 : f32 to vector<8x128xf32>
    %55 = arith.addf %52, %54 : vector<8x128xf32>
    %cst_15 = arith.constant 0.000000e+00 : f32
    %56 = vector.broadcast %cst_15 : f32 to vector<8x128xf32>
    %57 = arith.subf %56, %55 : vector<8x128xf32>
    %58 = math.exp %57 : vector<8x128xf32>
    %cst_16 = arith.constant 1.000000e+00 : f32
    %59 = vector.broadcast %cst_16 : f32 to vector<8x128xf32>
    %60 = arith.addf %59, %58 : vector<8x128xf32>
    %61 = tpu.reciprocal %60 {approx = true} : vector<8x128xf32> -> vector<8x128xf32>
    %c3_17 = arith.constant 3 : index
    %62 = memref.load %arg3[%c3_17] : memref<5xf32, #tpu.memory_space<smem>>
    %63 = vector.broadcast %62 : f32 to vector<8x128xf32>
    %64 = arith.mulf %61, %63 : vector<8x128xf32>
    %65 = arith.addf %49, %64 : vector<8x128xf32>
    %c4 = arith.constant 4 : index
    %66 = memref.load %arg1[%c4] : memref<5xf32, #tpu.memory_space<smem>>
    %67 = vector.broadcast %66 : f32 to vector<8x128xf32>
    %68 = arith.mulf %0, %67 : vector<8x128xf32>
    %c4_18 = arith.constant 4 : index
    %69 = memref.load %arg2[%c4_18] : memref<5xf32, #tpu.memory_space<smem>>
    %70 = vector.broadcast %69 : f32 to vector<8x128xf32>
    %71 = arith.addf %68, %70 : vector<8x128xf32>
    %cst_19 = arith.constant 0.000000e+00 : f32
    %72 = vector.broadcast %cst_19 : f32 to vector<8x128xf32>
    %73 = arith.subf %72, %71 : vector<8x128xf32>
    %74 = math.exp %73 : vector<8x128xf32>
    %cst_20 = arith.constant 1.000000e+00 : f32
    %75 = vector.broadcast %cst_20 : f32 to vector<8x128xf32>
    %76 = arith.addf %75, %74 : vector<8x128xf32>
    %77 = tpu.reciprocal %76 {approx = true} : vector<8x128xf32> -> vector<8x128xf32>
    %c4_21 = arith.constant 4 : index
    %78 = memref.load %arg3[%c4_21] : memref<5xf32, #tpu.memory_space<smem>>
    %79 = vector.broadcast %78 : f32 to vector<8x128xf32>
    %80 = arith.mulf %77, %79 : vector<8x128xf32>
    %81 = arith.addf %65, %80 : vector<8x128xf32>
    %c0_22 = arith.constant 0 : index
    %82 = memref.load %arg4[%c0_22] : memref<1xf32, #tpu.memory_space<smem>>
    %83 = vector.broadcast %82 : f32 to vector<8x128xf32>
    %84 = arith.addf %81, %83 : vector<8x128xf32>
    %c0_23 = arith.constant 0 : index
    %c0_24 = arith.constant 0 : index
    %85 = vector.load %arg6[%c0_23, %c0_24] : memref<8x128xf32, #tpu.memory_space<vmem>>, vector<8x128xf32>
    tpu.vector_store %arg6[%c0_23, %c0_24], %84 {strides = array<i32>} : memref<8x128xf32, #tpu.memory_space<vmem>>, vector<8x128xf32>,
    return
  }
  func.func @transform_0(%arg0: i32) -> i32 {
    %c0_i32 = arith.constant 0 : i32
    %c0_i32_0 = arith.constant 0 : i32
    return %c0_i32 : i32
  }
  func.func @transform_1(%arg0: i32) -> i32 {
    %c0_i32 = arith.constant 0 : i32
    %c0_i32_0 = arith.constant 0 : i32
    return %c0_i32 : i32
  }
  func.func @transform_2(%arg0: i32) -> i32 {
    %c0_i32 = arith.constant 0 : i32
    %c0_i32_0 = arith.constant 0 : i32
    return %c0_i32 : i32
  }
  func.func @transform_3(%arg0: i32) -> i32 {
    %c0_i32 = arith.constant 0 : i32
    %c0_i32_0 = arith.constant 0 : i32
    return %c0_i32 : i32
  }
  func.func @transform_4(%arg0: i32) -> (i32, i32) {
    %c0_i32 = arith.constant 0 : i32
    %c0_i32_0 = arith.constant 0 : i32
    return %arg0, %c0_i32 : i32, i32
  }
  func.func @transform_5(%arg0: i32) -> (i32, i32) {
    %c0_i32 = arith.constant 0 : i32
    %c0_i32_0 = arith.constant 0 : i32
    return %arg0, %c0_i32 : i32, i32
  }
}

</mosaic_0001>

<bundles_post_ra>
// kernel: tpu_custom_call.1
= control target key start
LH: loop header
LB: loop body
LE: loop exit
PB: predicated region body
PF: predicated region fallthrough
CT: control target
= control target key end

     0   :  { %11 = vsyncpa [#allocation5], 0  ;;  %s315_s0 = inlined_call_operand.vmem [shape: f32[5], index: 0, kind: input, shape index: {}]   ;;  %s316_s1 = inlined_call_operand.vmem [shape: f32[5], index: 1, kind: input, shape index: {}]   ;;  %s317_s2 = inlined_call_operand.vmem [shape: f32[5], index: 2, kind: input, shape index: {}]   ;;  %s318_s3 = inlined_call_operand.<no memory space> [shape: f32[1], index: 3, kind: input, shape index: {}]   ;;  %s319_s4 = inlined_call_operand.vmem [shape: f32[8,128], index: 4, kind: input, shape index: {}]   ;;  %s320_s5 = inlined_call_operand.hbm [shape: f32[8,128], index: 5, kind: output, shape index: {}]  }
   0x1   :  { %12 = vsyncpa [#allocation7], 0  ;;  %s30_s20 = sshll.u32 %s316_s1, 4  ;;  %s31_s20 = int_to_ptr.vmem [resolvable:$true] %s30_s20 }
   0x2   :  { %13 = vsyncpa [#allocation4], 0  ;;  %s20_s23 = sshll.u32 %s315_s0, 4  ;;  %s190_s24 = scalar_lea.vmem %s31_s20, 16  ;;  %s21_s23 = int_to_ptr.vmem [resolvable:$true] %s20_s23 }
   0x3   :  { %p191_p0 = scmp.ne.s32.totalorder %s31_s20, %s190_s24  ;;  %p195_p1 = scmp.lt.s32.totalorder %s31_s20, %s31_s20 }
   0x4   :  { %p196_p2 = scmp.lt.s32.totalorder %s190_s24, %s190_s24 }
   0x6   :  { %p197_p3 = por %p196_p2, %p195_p1 }
   0x8   :  { %p198_p4 = pnand %p197_p3, %p191_p0 }
   0xa   :  { %201 = shalt.err (!%p198_p4)
}
   0xb   :  { %s254_s25 = smov [#allocation6]   ;;  %s202_s26 = scalar_lea.vmem %s21_s23, 16 }
   0xc   :  { %33 = dma.vmem_to_smem %s31_s20, 16, %s254_s25, [#allocation7]  }
   0xd   :  { %p203_p5 = scmp.ne.s32.totalorder %s21_s23, %s202_s26  ;;  %p207_p6 = scmp.lt.s32.totalorder %s21_s23, %s21_s23 }
   0xe   :  { %p208_p7 = scmp.lt.s32.totalorder %s202_s26, %s202_s26 }
  0x10   :  { %p209_p8 = por %p208_p7, %p207_p6 }
  0x12   :  { %p210_p9 = pnand %p209_p8, %p203_p5 }
  0x14   :  { %213 = shalt.err (!%p210_p9)
}
  0x15   :  { %s255_s1 = smov [#allocation3]   ;;  %s40_s28 = sshll.u32 %s317_s2, 4  ;;  %s41_s28 = int_to_ptr.vmem [resolvable:$true] %s40_s28 }
  0x16   :  { %23 = dma.vmem_to_smem %s21_s23, 16, %s255_s1, [#allocation5]  }
  0x17   :  { %s214_s29 = scalar_lea.vmem %s41_s28, 16  ;;  %p219_p11 = scmp.lt.s32.totalorder %s41_s28, %s41_s28 }
  0x18   :  { %p215_p10 = scmp.ne.s32.totalorder %s41_s28, %s214_s29  ;;  %p220_p12 = scmp.lt.s32.totalorder %s214_s29, %s214_s29 }
  0x1a   :  { %p221_p13 = por %p220_p12, %p219_p11 }
  0x1c   :  { %p222_p0 = pnand %p221_p13, %p215_p10 }
  0x1e   :  { %225 = shalt.err (!%p222_p0)
}
  0x1f   :  { %s256_s30 = smov [#allocation8]  }
  0x20   :  { %43 = dma.vmem_to_smem %s41_s28, 16, %s256_s30, [#allocation7]  }
  0x21   :  { %248 = dma.done.wait [#allocation5], 16  }
  0x22   :  { %249 = vsyncadd [#allocation5], 4294967280 }
  0x23   :  { %250 = dma.done.wait [#allocation7], 32  }
  0x24   :  { %251 = vsyncadd [#allocation7], 4294967264 }
  0x25   :  { %57 = sfence }
  0x26   :  { %s59_s6 = sld [smem:[#allocation3]]  ;;  %s154_s8 = sld [smem:[#allocation3 + $0x1]]  ;;  %v58_v0 = vld [vmem:[%s319_s4] sm:$0xff]  ;;  %v135_v59 = vstv %s318_s3 }
  0x27   :  { %s62_s7 = sld [smem:[#allocation6]]  ;;  %s155_s9 = sld [smem:[#allocation6 + $0x1]] }
  0x28   :  { %s157_s2 = sld [smem:[#allocation3 + $0x2]]  ;;  %s160_s13 = sld [smem:[#allocation3 + $0x3]] }
  0x29   :  { %s158_s10 = sld [smem:[#allocation6 + $0x2]]  ;;  %s161_s14 = sld [smem:[#allocation6 + $0x3]] }
  0x2a   :  { %s163_s15 = sld [smem:[#allocation3 + $0x4]]  ;;  %s70_s4 = sld [smem:[#allocation8]] }
  0x2b   :  { %s164_s16 = sld [smem:[#allocation6 + $0x4]]  ;;  %s156_s17 = sld [smem:[#allocation8 + $0x1]] }
  0x2c   :  { %v60_v1 = vstv %s59_s6  ;;  %v75_v4 = vstv %s154_s8  ;;  %s159_s18 = sld [smem:[#allocation8 + $0x2]]  ;;  %s162_s19 = sld [smem:[#allocation8 + $0x3]] }
  0x2d   :  { %v63_v2 = vstv %s62_s7  ;;  %v61_v3 = vmul.f32 %v60_v1, %v58_v0  ;;  %v76_v5 = vmul.f32 %v75_v4, %v58_v0  ;;  %v78_v6 = vstv %s155_s9  ;;  %s165_s20 = sld [smem:[#allocation8 + $0x4]]  ;;  %s257_s23 = smov [#allocation9]  }
  0x2e   :  { %v90_v8 = vstv %s157_s2  ;;  %v105_v12 = vstv %s160_s13  ;;  %s144_s24 = sshll.u32 %s257_s23, 4  ;;  %s145_s24 = int_to_ptr.vmem [resolvable:$true] %s144_s24 }
  0x2f   :  { %v64_v7 = vadd.f32 %v63_v2, %v61_v3  ;;  %v93_v9 = vstv %s158_s10  ;;  %v79_v10 = vadd.f32 %v78_v6, %v76_v5  ;;  %v91_v11 = vmul.f32 %v90_v8, %v58_v0  ;;  %s226_s25 = scalar_lea.vmem %s145_s24, 128  ;;  %p231_p2 = scmp.lt.s32.totalorder %s145_s24, %s145_s24 }
  0x30   :  { %v106_v14 = vmul.f32 %v105_v12, %v58_v0  ;;  %v108_v15 = vstv %s161_s14  ;;  %v120_v18 = vstv %s163_s15  ;;  %v71_v41 = vstv %s70_s4  ;;  %p227_p1 = scmp.ne.s32.totalorder %s145_s24, %s226_s25  ;;  %p232_p3 = scmp.lt.s32.totalorder %s226_s25, %s226_s25 }
  0x31   :  { %v65_v13 = vsub.f32 0.0, %v64_v7  ;;  %v80_v16 = vsub.f32 0.0, %v79_v10  ;;  %v94_v17 = vadd.f32 %v93_v9, %v91_v11  ;;  %v123_v19 = vstv %s164_s16 }
  0x32   :  { %v109_v21 = vadd.f32 %v108_v15, %v106_v14  ;;  %v121_v22 = vmul.f32 %v120_v18, %v58_v0  ;;  %v86_v42 = vstv %s156_s17  ;;  %v101_v46 = vstv %s159_s18  ;;  %p233_p4 = por %p232_p3, %p231_p2 }
  0x33   :  { %v66_v20 = vmul.f32 1.442695, %v65_v13  ;;  %v81_v23 = vmul.f32 1.442695, %v80_v16  ;;  %v95_v24 = vsub.f32 0.0, %v94_v17  ;;  %v116_v48 = vstv %s162_s19 }
  0x34   :  { %v110_v25 = vsub.f32 0.0, %v109_v21  ;;  %v124_v26 = vadd.f32 %v123_v19, %v121_v22  ;;  %v131_v53 = vstv %s165_s20  ;;  %p234_p5 = pnand %p233_p4, %p227_p1 }
  0x35   :  { %170 = vpow2.f32 %v66_v20  ;;  %v96_v27 = vmul.f32 1.442695, %v95_v24 }
  0x36   :  { %172 = vpow2.f32 %v81_v23  ;;  %v111_v28 = vmul.f32 1.442695, %v110_v25  ;;  %v125_v29 = vsub.f32 0.0, %v124_v26 }
  0x37   :  { %174 = vpow2.f32 %v96_v27 }
  0x38   :  { %176 = vpow2.f32 %v111_v28  ;;  %v126_v30 = vmul.f32 1.442695, %v125_v29 }
  0x3a   :  { %178 = vpow2.f32 %v126_v30 }
  0x3f   :  { %v171_v31 = vpop.eup %170 }
  0x40   :  { %v173_v32 = vpop.eup %172  ;;  %v68_v33 = vadd.f32 1.0, %v171_v31 }
  0x41   :  { %v83_v34 = vadd.f32 1.0, %v173_v32  ;;  %v175_v35 = vpop.eup %174 }
  0x42   :  { %180 = vrcp.f32 %v68_v33  ;;  %v177_v36 = vpop.eup %176  ;;  %v98_v37 = vadd.f32 1.0, %v175_v35 }
  0x43   :  { %182 = vrcp.f32 %v83_v34  ;;  %v113_v38 = vadd.f32 1.0, %v177_v36 }
  0x44   :  { %v179_v39 = vpop.eup %178  ;;  %184 = vrcp.f32 %v98_v37 }
  0x45   :  { %186 = vrcp.f32 %v113_v38  ;;  %v128_v40 = vadd.f32 1.0, %v179_v39 }
  0x47   :  { %188 = vrcp.f32 %v128_v40 }
  0x4c   :  { %v181_v43 = vpop.eup %180 }
  0x4d   :  { %v183_v44 = vpop.eup %182  ;;  %v72_v45 = vmul.f32 %v181_v43, %v71_v41 }
  0x4e   :  { %v87_v47 = vmul.f32 %v183_v44, %v86_v42  ;;  %v185_v49 = vpop.eup %184 }
  0x4f   :  { %v187_v50 = vpop.eup %186  ;;  %v102_v52 = vmul.f32 %v185_v49, %v101_v46 }
  0x50   :  { %v88_v51 = vadd.f32 %v87_v47, %v72_v45  ;;  %v117_v54 = vmul.f32 %v187_v50, %v116_v48 }
  0x51   :  { %v189_v55 = vpop.eup %188 }
  0x52   :  { %v103_v56 = vadd.f32 %v102_v52, %v88_v51  ;;  %v132_v57 = vmul.f32 %v189_v55, %v131_v53 }
  0x54   :  { %v118_v58 = vadd.f32 %v117_v54, %v103_v56 }
  0x56   :  { %v133_v60 = vadd.f32 %v132_v57, %v118_v58 }
  0x58   :  { %v136_v61 = vadd.f32 %v135_v59, %v133_v60 }
  0x5a   :  { %137 = vst [vmem:[#allocation9] sm:$0xff] %v136_v61 }
  0x5b   :  { %237 = shalt.err (!%p234_p5)
}
  0x5c   :  { %s238_s0 = scalar_lea.hbm %s320_s5, 128 }
  0x5d   :  { %p239_p6 = scmp.ne.s32.totalorder %s320_s5, %s238_s0  ;;  %p242_p7 = scmp.lt.u32.totalorder %s238_s0, %s320_s5 }
  0x5f   :  { %p244_p8 = pnand %p242_p7, %p239_p6 }
  0x61   :  { %247 = shalt.err (!%p244_p8)
}
  0x62   :  { %147 = dma.vmem_to_hbm [thread:$0]  %s145_s24, 128, %s320_s5, [#allocation4]  }
  0x63   :  { %252 = dma.done.wait [#allocation4], 128  }
  0x64   :  { %253 = vsyncadd [#allocation4], 4294967168 }
  0x65   :  { %151 = vsyncpa [#allocation4], 1 }
  0x66   :  { %152 = vsyncpa [#allocation5], 1 }
  0x67   :  { %153 = vsyncpa [#allocation7], 1 }

</bundles_post_ra>
